<compile_context>
chip_gen: v5e
topology: v5e:2x2
jax: 0.10.0
libtpu: 0.0.40
codegen_flags: <defaults>
</compile_context>

<pallas_src>
import functools

import jax
import jax.numpy as jnp
from jax.experimental import pallas as pl
from jax.experimental.pallas import tpu as pltpu


def _mlp_kernel(params_ref, x_ref, o_ref, *, n_hidden):
    # params_ref: SMEM f32[3*H + 1] = [w1(H) | b1(H) | w2(H) | b2]
    # x_ref:      VMEM f32[1, N]  -- batch on the lane axis (lane-dense)
    # o_ref:      VMEM f32[1, N]
    xr = x_ref[...]                                   # (1, N)

    # Fold b2 and the j=0 hidden unit into the accumulator init:
    # no zero-fill, no trailing bias add.
    acc = (
        params_ref[2 * n_hidden]
        * jnp.maximum(params_ref[0] * xr + params_ref[n_hidden], 0.0)
        + params_ref[3 * n_hidden]
    )
    # Static unroll over the tiny hidden dim: each step is a couple of
    # scalar*vector / vector+scalar VPU ops on one f32 vreg row.
    for j in range(1, n_hidden):
        w1_j = params_ref[j]
        b1_j = params_ref[n_hidden + j]
        w2_j = params_ref[2 * n_hidden + j]
        acc = acc + w2_j * jnp.maximum(w1_j * xr + b1_j, 0.0)

    o_ref[...] = acc


def pack_params(w1, b1, w2, b2):
    """Pack all parameters into one flat f32 slab.

    Called ONCE at init time (not per forward call), so the concat never sits
    on the per-call path.
    w1: (1, H), b1: (1, H), w2: (H, 1), b2: (1, 1)  ->  f32[3*H + 1]
    """
    return jnp.concatenate(
        [w1[0, :], b1[0, :], w2[:, 0], b2.reshape(1)]
    ).astype(jnp.float32)


@functools.partial(jax.jit, static_argnames=("n_hidden",))
def net_forward(x, packed_params, *, n_hidden):
    """Forward pass of Net.

    x             : (N, 1) f32   (same layout as the torch input)
    packed_params : f32[3*H + 1] from pack_params()
    Returns (N, 1) f32, identical semantics to the PyTorch module.
    """
    n, n_features = x.shape
    # MXU-free VPU rewrite relies on F=1 / O=1 (exactly Net(1, 10, 1)).
    assert n_features == 1

    # Batch -> lane axis; under jit this reshape fuses into the pallas_call
    # input.  Full-array (1, N) blocks => no 128-padding, no output slice.
    x_row = x.reshape(1, n)

    y_row = pl.pallas_call(
        functools.partial(_mlp_kernel, n_hidden=n_hidden),
        out_shape=jax.ShapeDtypeStruct((1, n), jnp.float32),
        in_specs=[
            pl.BlockSpec(memory_space=pltpu.MemorySpace.SMEM),  # packed params
            pl.BlockSpec((1, n), lambda: (0, 0)),               # x (VMEM)
        ],
        out_specs=pl.BlockSpec((1, n), lambda: (0, 0)),
    )(packed_params, x_row)

    return y_row.reshape(n, 1)


def init_params(key, n_features, n_hidden, n_output):
    """Deterministic init mimicking torch.nn.Linear default (U(-1/sqrt(fan_in), +))."""
    k1, k2, k3, k4 = jax.random.split(key, 4)
    lim1 = 1.0 / jnp.sqrt(jnp.float32(n_features))
    lim2 = 1.0 / jnp.sqrt(jnp.float32(n_hidden))
    w1 = jax.random.uniform(k1, (n_features, n_hidden), jnp.float32, -lim1, lim1)
    b1 = jax.random.uniform(k2, (1, n_hidden), jnp.float32, -lim1, lim1)
    w2 = jax.random.uniform(k3, (n_hidden, n_output), jnp.float32, -lim2, lim2)
    b2 = jax.random.uniform(k4, (1, n_output), jnp.float32, -lim2, lim2)
    return w1, b1, w2, b2


if __name__ == "__main__":
    # Matches the reference script: x = unsqueeze(linspace(-1, 1, 100), dim=1)
    n_features, n_hidden, n_output = 1, 10, 1
    x = jnp.expand_dims(
        jnp.linspace(-1.0, 1.0, 100, dtype=jnp.float32), axis=1
    )  # (100, 1)

    key = jax.random.PRNGKey(0)
    w1, b1, w2, b2 = init_params(key, n_features, n_hidden, n_output)
    params = pack_params(w1, b1, w2, b2)  # packed once at init, off the hot path

    y = net_forward(x, params, n_hidden=n_hidden)
    y = jax.block_until_ready(y)

    # Pure-JAX reference check (matmul form of the same network).
    h_ref = jnp.maximum(x @ w1 + b1, 0.0)
    y_ref = h_ref @ w2 + b2
    assert y.shape == (100, 1)
    assert jnp.allclose(y, y_ref, atol=1e-5, rtol=1e-5)

    print("KERNEL_OK")
</pallas_src>

<mosaic_0001>
module attributes {stable_mosaic.version = 11 : i64} {
  func.func @_mlp_kernel(%arg0: memref<31xf32, #tpu.memory_space<smem>>, %arg1: memref<1x100xf32, #tpu.memory_space<vmem>>, %arg2: memref<1x100xf32, #tpu.memory_space<vmem>>) attributes {dimension_semantics = [], scalar_prefetch = 0 : i64, scratch_operands = 0 : i64, tpu.core_type = #tpu.core_type<tc>} {
    %c0 = arith.constant 0 : index
    %c0_0 = arith.constant 0 : index
    %0 = vector.load %arg1[%c0, %c0_0] : memref<1x100xf32, #tpu.memory_space<vmem>>, vector<1x100xf32>
    %c20 = arith.constant 20 : index
    %1 = memref.load %arg0[%c20] : memref<31xf32, #tpu.memory_space<smem>>
    %c0_1 = arith.constant 0 : index
    %2 = memref.load %arg0[%c0_1] : memref<31xf32, #tpu.memory_space<smem>>
    %3 = vector.broadcast %2 : f32 to vector<1x100xf32>
    %4 = arith.mulf %3, %0 : vector<1x100xf32>
    %c10 = arith.constant 10 : index
    %5 = memref.load %arg0[%c10] : memref<31xf32, #tpu.memory_space<smem>>
    %6 = vector.broadcast %5 : f32 to vector<1x100xf32>
    %7 = arith.addf %4, %6 : vector<1x100xf32>
    %cst = arith.constant 0.000000e+00 : f32
    %8 = vector.broadcast %cst : f32 to vector<1x100xf32>
    %9 = arith.maximumf %7, %8 : vector<1x100xf32>
    %10 = vector.broadcast %1 : f32 to vector<1x100xf32>
    %11 = arith.mulf %10, %9 : vector<1x100xf32>
    %c30 = arith.constant 30 : index
    %12 = memref.load %arg0[%c30] : memref<31xf32, #tpu.memory_space<smem>>
    %13 = vector.broadcast %12 : f32 to vector<1x100xf32>
    %14 = arith.addf %11, %13 : vector<1x100xf32>
    %c1 = arith.constant 1 : index
    %15 = memref.load %arg0[%c1] : memref<31xf32, #tpu.memory_space<smem>>
    %c11 = arith.constant 11 : index
    %16 = memref.load %arg0[%c11] : memref<31xf32, #tpu.memory_space<smem>>
    %c21 = arith.constant 21 : index
    %17 = memref.load %arg0[%c21] : memref<31xf32, #tpu.memory_space<smem>>
    %18 = vector.broadcast %15 : f32 to vector<1x100xf32>
    %19 = arith.mulf %18, %0 : vector<1x100xf32>
    %20 = vector.broadcast %16 : f32 to vector<1x100xf32>
    %21 = arith.addf %19, %20 : vector<1x100xf32>
    %cst_2 = arith.constant 0.000000e+00 : f32
    %22 = vector.broadcast %cst_2 : f32 to vector<1x100xf32>
    %23 = arith.maximumf %21, %22 : vector<1x100xf32>
    %24 = vector.broadcast %17 : f32 to vector<1x100xf32>
    %25 = arith.mulf %24, %23 : vector<1x100xf32>
    %26 = arith.addf %14, %25 : vector<1x100xf32>
    %c2 = arith.constant 2 : index
    %27 = memref.load %arg0[%c2] : memref<31xf32, #tpu.memory_space<smem>>
    %c12 = arith.constant 12 : index
    %28 = memref.load %arg0[%c12] : memref<31xf32, #tpu.memory_space<smem>>
    %c22 = arith.constant 22 : index
    %29 = memref.load %arg0[%c22] : memref<31xf32, #tpu.memory_space<smem>>
    %30 = vector.broadcast %27 : f32 to vector<1x100xf32>
    %31 = arith.mulf %30, %0 : vector<1x100xf32>
    %32 = vector.broadcast %28 : f32 to vector<1x100xf32>
    %33 = arith.addf %31, %32 : vector<1x100xf32>
    %cst_3 = arith.constant 0.000000e+00 : f32
    %34 = vector.broadcast %cst_3 : f32 to vector<1x100xf32>
    %35 = arith.maximumf %33, %34 : vector<1x100xf32>
    %36 = vector.broadcast %29 : f32 to vector<1x100xf32>
    %37 = arith.mulf %36, %35 : vector<1x100xf32>
    %38 = arith.addf %26, %37 : vector<1x100xf32>
    %c3 = arith.constant 3 : index
    %39 = memref.load %arg0[%c3] : memref<31xf32, #tpu.memory_space<smem>>
    %c13 = arith.constant 13 : index
    %40 = memref.load %arg0[%c13] : memref<31xf32, #tpu.memory_space<smem>>
    %c23 = arith.constant 23 : index
    %41 = memref.load %arg0[%c23] : memref<31xf32, #tpu.memory_space<smem>>
    %42 = vector.broadcast %39 : f32 to vector<1x100xf32>
    %43 = arith.mulf %42, %0 : vector<1x100xf32>
    %44 = vector.broadcast %40 : f32 to vector<1x100xf32>
    %45 = arith.addf %43, %44 : vector<1x100xf32>
    %cst_4 = arith.constant 0.000000e+00 : f32
    %46 = vector.broadcast %cst_4 : f32 to vector<1x100xf32>
    %47 = arith.maximumf %45, %46 : vector<1x100xf32>
    %48 = vector.broadcast %41 : f32 to vector<1x100xf32>
    %49 = arith.mulf %48, %47 : vector<1x100xf32>
    %50 = arith.addf %38, %49 : vector<1x100xf32>
    %c4 = arith.constant 4 : index
    %51 = memref.load %arg0[%c4] : memref<31xf32, #tpu.memory_space<smem>>
    %c14 = arith.constant 14 : index
    %52 = memref.load %arg0[%c14] : memref<31xf32, #tpu.memory_space<smem>>
    %c24 = arith.constant 24 : index
    %53 = memref.load %arg0[%c24] : memref<31xf32, #tpu.memory_space<smem>>
    %54 = vector.broadcast %51 : f32 to vector<1x100xf32>
    %55 = arith.mulf %54, %0 : vector<1x100xf32>
    %56 = vector.broadcast %52 : f32 to vector<1x100xf32>
    %57 = arith.addf %55, %56 : vector<1x100xf32>
    %cst_5 = arith.constant 0.000000e+00 : f32
    %58 = vector.broadcast %cst_5 : f32 to vector<1x100xf32>
    %59 = arith.maximumf %57, %58 : vector<1x100xf32>
    %60 = vector.broadcast %53 : f32 to vector<1x100xf32>
    %61 = arith.mulf %60, %59 : vector<1x100xf32>
    %62 = arith.addf %50, %61 : vector<1x100xf32>
    %c5 = arith.constant 5 : index
    %63 = memref.load %arg0[%c5] : memref<31xf32, #tpu.memory_space<smem>>
    %c15 = arith.constant 15 : index
    %64 = memref.load %arg0[%c15] : memref<31xf32, #tpu.memory_space<smem>>
    %c25 = arith.constant 25 : index
    %65 = memref.load %arg0[%c25] : memref<31xf32, #tpu.memory_space<smem>>
    %66 = vector.broadcast %63 : f32 to vector<1x100xf32>
    %67 = arith.mulf %66, %0 : vector<1x100xf32>
    %68 = vector.broadcast %64 : f32 to vector<1x100xf32>
    %69 = arith.addf %67, %68 : vector<1x100xf32>
    %cst_6 = arith.constant 0.000000e+00 : f32
    %70 = vector.broadcast %cst_6 : f32 to vector<1x100xf32>
    %71 = arith.maximumf %69, %70 : vector<1x100xf32>
    %72 = vector.broadcast %65 : f32 to vector<1x100xf32>
    %73 = arith.mulf %72, %71 : vector<1x100xf32>
    %74 = arith.addf %62, %73 : vector<1x100xf32>
    %c6 = arith.constant 6 : index
    %75 = memref.load %arg0[%c6] : memref<31xf32, #tpu.memory_space<smem>>
    %c16 = arith.constant 16 : index
    %76 = memref.load %arg0[%c16] : memref<31xf32, #tpu.memory_space<smem>>
    %c26 = arith.constant 26 : index
    %77 = memref.load %arg0[%c26] : memref<31xf32, #tpu.memory_space<smem>>
    %78 = vector.broadcast %75 : f32 to vector<1x100xf32>
    %79 = arith.mulf %78, %0 : vector<1x100xf32>
    %80 = vector.broadcast %76 : f32 to vector<1x100xf32>
    %81 = arith.addf %79, %80 : vector<1x100xf32>
    %cst_7 = arith.constant 0.000000e+00 : f32
    %82 = vector.broadcast %cst_7 : f32 to vector<1x100xf32>
    %83 = arith.maximumf %81, %82 : vector<1x100xf32>
    %84 = vector.broadcast %77 : f32 to vector<1x100xf32>
    %85 = arith.mulf %84, %83 : vector<1x100xf32>
    %86 = arith.addf %74, %85 : vector<1x100xf32>
    %c7 = arith.constant 7 : index
    %87 = memref.load %arg0[%c7] : memref<31xf32, #tpu.memory_space<smem>>
    %c17 = arith.constant 17 : index
    %88 = memref.load %arg0[%c17] : memref<31xf32, #tpu.memory_space<smem>>
    %c27 = arith.constant 27 : index
    %89 = memref.load %arg0[%c27] : memref<31xf32, #tpu.memory_space<smem>>
    %90 = vector.broadcast %87 : f32 to vector<1x100xf32>
    %91 = arith.mulf %90, %0 : vector<1x100xf32>
    %92 = vector.broadcast %88 : f32 to vector<1x100xf32>
    %93 = arith.addf %91, %92 : vector<1x100xf32>
    %cst_8 = arith.constant 0.000000e+00 : f32
    %94 = vector.broadcast %cst_8 : f32 to vector<1x100xf32>
    %95 = arith.maximumf %93, %94 : vector<1x100xf32>
    %96 = vector.broadcast %89 : f32 to vector<1x100xf32>
    %97 = arith.mulf %96, %95 : vector<1x100xf32>
    %98 = arith.addf %86, %97 : vector<1x100xf32>
    %c8 = arith.constant 8 : index
    %99 = memref.load %arg0[%c8] : memref<31xf32, #tpu.memory_space<smem>>
    %c18 = arith.constant 18 : index
    %100 = memref.load %arg0[%c18] : memref<31xf32, #tpu.memory_space<smem>>
    %c28 = arith.constant 28 : index
    %101 = memref.load %arg0[%c28] : memref<31xf32, #tpu.memory_space<smem>>
    %102 = vector.broadcast %99 : f32 to vector<1x100xf32>
    %103 = arith.mulf %102, %0 : vector<1x100xf32>
    %104 = vector.broadcast %100 : f32 to vector<1x100xf32>
    %105 = arith.addf %103, %104 : vector<1x100xf32>
    %cst_9 = arith.constant 0.000000e+00 : f32
    %106 = vector.broadcast %cst_9 : f32 to vector<1x100xf32>
    %107 = arith.maximumf %105, %106 : vector<1x100xf32>
    %108 = vector.broadcast %101 : f32 to vector<1x100xf32>
    %109 = arith.mulf %108, %107 : vector<1x100xf32>
    %110 = arith.addf %98, %109 : vector<1x100xf32>
    %c9 = arith.constant 9 : index
    %111 = memref.load %arg0[%c9] : memref<31xf32, #tpu.memory_space<smem>>
    %c19 = arith.constant 19 : index
    %112 = memref.load %arg0[%c19] : memref<31xf32, #tpu.memory_space<smem>>
    %c29 = arith.constant 29 : index
    %113 = memref.load %arg0[%c29] : memref<31xf32, #tpu.memory_space<smem>>
    %114 = vector.broadcast %111 : f32 to vector<1x100xf32>
    %115 = arith.mulf %114, %0 : vector<1x100xf32>
    %116 = vector.broadcast %112 : f32 to vector<1x100xf32>
    %117 = arith.addf %115, %116 : vector<1x100xf32>
    %cst_10 = arith.constant 0.000000e+00 : f32
    %118 = vector.broadcast %cst_10 : f32 to vector<1x100xf32>
    %119 = arith.maximumf %117, %118 : vector<1x100xf32>
    %120 = vector.broadcast %113 : f32 to vector<1x100xf32>
    %121 = arith.mulf %120, %119 : vector<1x100xf32>
    %122 = arith.addf %110, %121 : vector<1x100xf32>
    %c0_11 = arith.constant 0 : index
    %c0_12 = arith.constant 0 : index
    %123 = vector.load %arg2[%c0_11, %c0_12] : memref<1x100xf32, #tpu.memory_space<vmem>>, vector<1x100xf32>
    tpu.vector_store %arg2[%c0_11, %c0_12], %122 {strides = array<i32>} : memref<1x100xf32, #tpu.memory_space<vmem>>, vector<1x100xf32>,
    return
  }
}

</mosaic_0001>

<bundles_post_ra>
// kernel: net_forward.1
= control target key start
LH: loop header
LB: loop body
LE: loop exit
PB: predicated region body
PF: predicated region fallthrough
CT: control target
= control target key end

     0   :  { %7 = vsyncpa [#allocation5], 0  ;;  %s334_s0 = inlined_call_operand.vmem [shape: f32[31], index: 0, kind: input, shape index: {}]   ;;  %s335_s1 = inlined_call_operand.hbm [shape: f32[1,100], index: 1, kind: input, shape index: {}]   ;;  %s336_s2 = inlined_call_operand.hbm [shape: f32[1,100], index: 2, kind: output, shape index: {}]  }
   0x1   :  { %8 = vsyncpa [#allocation3], 0 }
   0x2   :  { %9 = vsyncpa [#allocation4], 0  ;;  %s15_s11 = sshll.u32 %s334_s0, 4  ;;  %s24_s14 = sshll.u32 %s335_s1, 4  ;;  %s16_s11 = int_to_ptr.vmem [resolvable:$true] %s15_s11  ;;  %s25_s14 = int_to_ptr.hbm [resolvable:$true] %s24_s14 }
   0x3   :  { %s271_s15 = smov [#allocation2]   ;;  %s272_s16 = smov [#allocation6]  }
   0x4   :  { %18 = dma.vmem_to_smem %s16_s11, 16, %s271_s15, [#allocation5]  }
   0x5   :  { %s26_s17 = sshll.u32 %s272_s16, 4  ;;  %s27_s17 = int_to_ptr.vmem [resolvable:$true] %s26_s17 }
   0x6   :  { %29 = dma.hbm_to_vmem [thread:$0]  %s25_s14, 16, %s27_s17, [#allocation3]  }
   0x7   :  { %265 = dma.done.wait [#allocation5], 16  }
   0x8   :  { %266 = vsyncadd [#allocation5], 4294967280 }
   0x9   :  { %267 = dma.done.wait [#allocation3], 16  }
   0xa   :  { %268 = vsyncadd [#allocation3], 4294967280 }
   0xb   :  { %38 = sfence }
   0xc   :  { %s172_s18 = sld [smem:[#allocation2 + $0x14]]  ;;  %v297_v0 = vld [vmem:[#allocation6] sm:$0x1]  ;;  %vm152_vm0 = vcmask 811008  }
   0xd   :  { %s41_s19 = sld [smem:[#allocation2]] }
   0xe   :  { %s173_s0 = sld [smem:[#allocation2 + $0xa]] }
   0xf   :  { %s295_s20 = sld [smem:[#allocation2 + $0x1e]] }
  0x10   :  { %s175_s21 = sld [smem:[#allocation2 + $0x1]] }
  0x11   :  { %s176_s1 = sld [smem:[#allocation2 + $0xb]] }
  0x12   :  { %s299_s22 = sld [smem:[#allocation2 + $0x15]]  ;;  %v48_v6 = vstv %s172_s18 }
  0x13   :  { %v42_v1 = vstv %s41_s19  ;;  %s178_s23 = sld [smem:[#allocation2 + $0x2]]  ;;  %s273_s19 = smov [#allocation7]  }
  0x14   :  { %v43_v2 = vmul.f32 %v42_v1, %v297_v0  ;;  %v45_v3 = vstv %s173_s0  ;;  %s179_s24 = sld [smem:[#allocation2 + $0xc]]  ;;  %s159_s0 = sshll.u32 %s273_s19, 4  ;;  %s160_s0 = int_to_ptr.vmem [resolvable:$true] %s159_s0 }
  0x15   :  { %s302_s25 = sld [smem:[#allocation2 + $0x16]]  ;;  %v51_v10 = vstv %s295_s20 }
  0x16   :  { %v46_v4 = vadd.f32 %v45_v3, %v43_v2  ;;  %v56_v5 = vstv %s175_s21  ;;  %s181_s26 = sld [smem:[#allocation2 + $0x3]] }
  0x17   :  { %v57_v7 = vmul.f32 %v56_v5, %v297_v0  ;;  %v58_v8 = vstv %s176_s1  ;;  %s182_s27 = sld [smem:[#allocation2 + $0xd]]  ;;  %s161_s1 = sshll.u32 %s336_s2, 4  ;;  %s162_s1 = int_to_ptr.hbm [resolvable:$true] %s161_s1 }
  0x18   :  { %v47_v9 = vmax.f32 %v46_v4, 0.0  ;;  %s305_s28 = sld [smem:[#allocation2 + $0x17]]  ;;  %v61_v14 = vstv %s299_s22 }
  0x19   :  { %v59_v11 = vadd.f32 %v58_v8, %v57_v7  ;;  %v67_v12 = vstv %s178_s23  ;;  %s184_s29 = sld [smem:[#allocation2 + $0x4]] }
  0x1a   :  { %v49_v13 = vmul.f32 %v48_v6, %v47_v9  ;;  %v68_v15 = vmul.f32 %v67_v12, %v297_v0  ;;  %v69_v16 = vstv %s179_s24  ;;  %s185_s30 = sld [smem:[#allocation2 + $0xe]] }
  0x1b   :  { %v60_v17 = vmax.f32 %v59_v11, 0.0  ;;  %s310_s3 = sld [smem:[#allocation2 + $0x18]]  ;;  %v72_v22 = vstv %s302_s25 }
  0x1c   :  { %v52_v18 = vadd.f32 %v51_v10, %v49_v13  ;;  %v70_v19 = vadd.f32 %v69_v16, %v68_v15  ;;  %v78_v20 = vstv %s181_s26  ;;  %s187_s4 = sld [smem:[#allocation2 + $0x5]] }
  0x1d   :  { %v62_v21 = vmul.f32 %v61_v14, %v60_v17  ;;  %v79_v23 = vmul.f32 %v78_v20, %v297_v0  ;;  %v80_v24 = vstv %s182_s27  ;;  %s188_s5 = sld [smem:[#allocation2 + $0xf]] }
  0x1e   :  { %v71_v25 = vmax.f32 %v70_v19, 0.0  ;;  %s314_s6 = sld [smem:[#allocation2 + $0x19]]  ;;  %v83_v30 = vstv %s305_s28 }
  0x1f   :  { %v63_v26 = vadd.f32 %v62_v21, %v52_v18  ;;  %v81_v27 = vadd.f32 %v80_v24, %v79_v23  ;;  %v89_v28 = vstv %s184_s29  ;;  %s190_s7 = sld [smem:[#allocation2 + $0x6]] }
  0x20   :  { %v73_v29 = vmul.f32 %v72_v22, %v71_v25  ;;  %v90_v31 = vmul.f32 %v89_v28, %v297_v0  ;;  %v91_v32 = vstv %s185_s30  ;;  %s191_s8 = sld [smem:[#allocation2 + $0x10]] }
  0x21   :  { %v82_v33 = vmax.f32 %v81_v27, 0.0  ;;  %s318_s9 = sld [smem:[#allocation2 + $0x1a]]  ;;  %v94_v38 = vstv %s310_s3 }
  0x22   :  { %v74_v34 = vadd.f32 %v73_v29, %v63_v26  ;;  %v92_v35 = vadd.f32 %v91_v32, %v90_v31  ;;  %v100_v36 = vstv %s187_s4  ;;  %s193_s10 = sld [smem:[#allocation2 + $0x7]] }
  0x23   :  { %v84_v37 = vmul.f32 %v83_v30, %v82_v33  ;;  %v101_v39 = vmul.f32 %v100_v36, %v297_v0  ;;  %v102_v40 = vstv %s188_s5  ;;  %s194_s11 = sld [smem:[#allocation2 + $0x11]] }
  0x24   :  { %v93_v41 = vmax.f32 %v92_v35, 0.0  ;;  %s322_s12 = sld [smem:[#allocation2 + $0x1b]]  ;;  %v105_v46 = vstv %s314_s6 }
  0x25   :  { %v85_v42 = vadd.f32 %v84_v37, %v74_v34  ;;  %v103_v43 = vadd.f32 %v102_v40, %v101_v39  ;;  %v111_v44 = vstv %s190_s7  ;;  %s196_s13 = sld [smem:[#allocation2 + $0x8]] }
  0x26   :  { %v95_v45 = vmul.f32 %v94_v38, %v93_v41  ;;  %v112_v47 = vmul.f32 %v111_v44, %v297_v0  ;;  %v113_v48 = vstv %s191_s8  ;;  %s197_s14 = sld [smem:[#allocation2 + $0x12]] }
  0x27   :  { %v104_v49 = vmax.f32 %v103_v43, 0.0  ;;  %s198_s15 = sld [smem:[#allocation2 + $0x1c]]  ;;  %v116_v54 = vstv %s318_s9 }
  0x28   :  { %v96_v50 = vadd.f32 %v95_v45, %v85_v42  ;;  %v114_v51 = vadd.f32 %v113_v48, %v112_v47  ;;  %v122_v52 = vstv %s193_s10  ;;  %s199_s16 = sld [smem:[#allocation2 + $0x9]] }
  0x29   :  { %v106_v53 = vmul.f32 %v105_v46, %v104_v49  ;;  %v123_v55 = vmul.f32 %v122_v52, %v297_v0  ;;  %v124_v56 = vstv %s194_s11  ;;  %s200_s17 = sld [smem:[#allocation2 + $0x13]] }
  0x2a   :  { %v115_v57 = vmax.f32 %v114_v51, 0.0  ;;  %s201_s18 = sld [smem:[#allocation2 + $0x1d]]  ;;  %v127_v62 = vstv %s322_s12 }
  0x2b   :  { %v107_v58 = vadd.f32 %v106_v53, %v96_v50  ;;  %v125_v59 = vadd.f32 %v124_v56, %v123_v55  ;;  %v133_v60 = vstv %s196_s13 }
  0x2c   :  { %v117_v61 = vmul.f32 %v116_v54, %v115_v57  ;;  %v134_v63 = vmul.f32 %v133_v60, %v297_v0  ;;  %v135_v1 = vstv %s197_s14 }
  0x2d   :  { %v126_v2 = vmax.f32 %v125_v59, 0.0  ;;  %v138_v7 = vstv %s198_s15 }
  0x2e   :  { %v118_v3 = vadd.f32 %v117_v61, %v107_v58  ;;  %v136_v4 = vadd.f32 %v135_v1, %v134_v63  ;;  %v144_v5 = vstv %s199_s16 }
  0x2f   :  { %v128_v6 = vmul.f32 %v127_v62, %v126_v2  ;;  %v145_v8 = vmul.f32 %v144_v5, %v297_v0  ;;  %v146_v9 = vstv %s200_s17 }
  0x30   :  { %v137_v10 = vmax.f32 %v136_v4, 0.0  ;;  %v149_v14 = vstv %s201_s18 }
  0x31   :  { %v129_v11 = vadd.f32 %v128_v6, %v118_v3  ;;  %v147_v12 = vadd.f32 %v146_v9, %v145_v8 }
  0x32   :  { %v139_v13 = vmul.f32 %v138_v7, %v137_v10 }
  0x33   :  { %v148_v15 = vmax.f32 %v147_v12, 0.0 }
  0x34   :  { %v140_v16 = vadd.f32 %v139_v13, %v129_v11 }
  0x35   :  { %v150_v17 = vmul.f32 %v149_v14, %v148_v15 }
  0x37   :  { %v151_v18 = vadd.f32 %v150_v17, %v140_v16 }
  0x39   :  { %153 = vst.msk [vmem:[#allocation7] sm:$0x1] %vm152_vm0, %v151_v18 }
  0x3a   :  { %164 = dma.vmem_to_hbm [thread:$0]  %s160_s0, 16, %s162_s1, [#allocation4]  }
  0x3b   :  { %269 = dma.done.wait [#allocation4], 16  }
  0x3c   :  { %270 = vsyncadd [#allocation4], 4294967280 }
  0x3d   :  { %169 = vsyncpa [#allocation3], 1 }
  0x3e   :  { %170 = vsyncpa [#allocation4], 1 }
  0x3f   :  { %171 = vsyncpa [#allocation5], 1 }

</bundles_post_ra>
